<compile_context>
chip_gen: v7x
topology: tpu7x:2x2x1
jax: 0.10.0
libtpu: 0.0.40
codegen_flags: <defaults>
</compile_context>

<pallas_src>
import functools

import jax
import jax.numpy as jnp
from jax.experimental import pallas as pl
from jax.experimental.pallas import tpu as pltpu


def _round_up(x, m):
    return ((x + m - 1) // m) * m


# ---------------------------------------------------------------------------
# Fused kernel: two deterministic Linears + Bayesian Linear (sampled in-kernel)
# + residual add + feature mean + KL(q || N(0,1)).
# ---------------------------------------------------------------------------
def _one_pixel_kernel(x_ref, w0_ref, b0_ref, w1_ref, b1_ref,
                      muw_ref, rhow_ref, epsw_ref,
                      mub_ref, rhob_ref, epsb_ref,
                      out_ref, kl_ref, *, n_features):
    # --- Bayesian weight/bias sampling (stable softplus), reused for KL ----
    mu_w = muw_ref[...].astype(jnp.float32)
    rho_w = rhow_ref[...].astype(jnp.float32)
    eps_w = epsw_ref[...].astype(jnp.float32)
    mu_b = mub_ref[...].astype(jnp.float32)
    rho_b = rhob_ref[...].astype(jnp.float32)
    eps_b = epsb_ref[...].astype(jnp.float32)

    sig_w = jax.nn.softplus(rho_w)
    sig_b = jax.nn.softplus(rho_b)
    w2 = mu_w + sig_w * eps_w                       # sampled weight (42, 42)
    b2 = mu_b + sig_b * eps_b                       # sampled bias   (1, 42)

    # --- forward path -------------------------------------------------------
    x = x_ref[...].astype(jnp.float32)              # (tb, 84)
    x0 = jnp.dot(x, w0_ref[...], preferred_element_type=jnp.float32) + b0_ref[...]
    x1 = jnp.dot(x, w1_ref[...], preferred_element_type=jnp.float32) + b1_ref[...]
    y = jnp.dot(x0, w2, preferred_element_type=jnp.float32) + b2 + x1  # (tb, 42)

    # x.mean(dim=1).unsqueeze(-1) -> (tb, 1)
    out_ref[...] = (jnp.sum(y, axis=1, keepdims=True)
                    * (1.0 / n_features)).astype(out_ref.dtype)

    # --- KL divergence vs. N(0, 1), fused with the sampling -----------------
    # TODO(synk): BayesLinear internals are not visible in the spec; this uses
    # the mean-over-elements KL convention (weight KL mean + bias KL mean).
    @pl.when(pl.program_id(0) == 0)
    def _():
        kl_w = -jnp.log(sig_w) + 0.5 * (sig_w * sig_w + mu_w * mu_w) - 0.5
        kl_b = -jnp.log(sig_b) + 0.5 * (sig_b * sig_b + mu_b * mu_b) - 0.5
        kl = (jnp.mean(kl_w, axis=(0, 1), keepdims=True)
              + jnp.mean(kl_b, axis=(0, 1), keepdims=True))
        kl_ref[...] = kl.astype(kl_ref.dtype)


def one_pixel_forward(x, params, block_rows=256):
    """Runs the full OnePixel forward as one pallas_call.

    Returns (out, kl) with out.shape == (B, 1), kl a scalar.
    """
    B, fin = x.shape
    fin_w, h = params["w0"].shape
    assert fin == fin_w

    # Batch tiling: one grid axis over row-tiles; weights resident in VMEM.
    tb = min(_round_up(B, 8), block_rows)
    bp = _round_up(B, tb)
    xp = x if bp == B else jnp.zeros((bp, fin), x.dtype).at[:B].set(x)

    def full_spec(shape):
        return pl.BlockSpec(shape, lambda i: (0, 0))

    out, kl = pl.pallas_call(
        functools.partial(_one_pixel_kernel, n_features=h),
        out_shape=(jax.ShapeDtypeStruct((bp, 1), jnp.float32),
                   jax.ShapeDtypeStruct((1, 1), jnp.float32)),
        grid_spec=pltpu.PrefetchScalarGridSpec(
            num_scalar_prefetch=0,
            grid=(bp // tb,),
            in_specs=[
                pl.BlockSpec((tb, fin), lambda i: (i, 0)),     # x (tiled rows)
                full_spec(params["w0"].shape),                 # (84, 42)
                full_spec(params["b0"].shape),                 # (1, 42)
                full_spec(params["w1"].shape),
                full_spec(params["b1"].shape),
                full_spec(params["mu_w"].shape),               # (42, 42)
                full_spec(params["rho_w"].shape),
                full_spec(params["eps_w"].shape),
                full_spec(params["mu_b"].shape),               # (1, 42)
                full_spec(params["rho_b"].shape),
                full_spec(params["eps_b"].shape),
            ],
            out_specs=(pl.BlockSpec((tb, 1), lambda i: (i, 0)),
                       pl.BlockSpec((1, 1), lambda i: (0, 0))),
        ),
        compiler_params=pltpu.CompilerParams(
            dimension_semantics=("arbitrary",)),
    )(xp, params["w0"], params["b0"], params["w1"], params["b1"],
      params["mu_w"], params["rho_w"], params["eps_w"],
      params["mu_b"], params["rho_b"], params["eps_b"])

    return out[:B], kl[0, 0]


# ---------------------------------------------------------------------------
# Deterministic synthetic parameters (shapes follow the module __init__).
# Weights stored as (in_features, out_features) so the kernel computes x @ W.
# ---------------------------------------------------------------------------
def init_params(key, in_features=84, out_features=42):
    keys = iter(jax.random.split(key, 16))

    def nrm(shape, scale=0.1):
        return scale * jax.random.normal(next(keys), shape, jnp.float32)

    p = {}
    p["w0"], p["b0"] = nrm((in_features, out_features)), nrm((1, out_features))
    p["w1"], p["b1"] = nrm((in_features, out_features)), nrm((1, out_features))
    # BayesLinear(42, 42): variational posterior params + fixed eps sample.
    p["mu_w"] = nrm((out_features, out_features))
    p["rho_w"] = -3.0 + nrm((out_features, out_features))
    p["eps_w"] = jax.random.normal(next(keys), (out_features, out_features),
                                   jnp.float32)
    p["mu_b"] = nrm((1, out_features))
    p["rho_b"] = -3.0 + nrm((1, out_features))
    p["eps_b"] = jax.random.normal(next(keys), (1, out_features), jnp.float32)
    return p


if __name__ == "__main__":
    B, IN_F, OUT_F = 8, 84, 42
    key = jax.random.PRNGKey(0)
    kx, kp = jax.random.split(key)
    x = jax.random.normal(kx, (B, IN_F), jnp.float32)
    params = init_params(kp, IN_F, OUT_F)

    fwd = jax.jit(one_pixel_forward)
    out, kl = fwd(x, params)
    out = jax.block_until_ready(out)
    kl = jax.block_until_ready(kl)

    assert out.shape == (B, 1) and out.dtype == jnp.float32
    assert kl.shape == ()
    assert bool(jnp.all(jnp.isfinite(out))) and bool(jnp.isfinite(kl))
    print("KERNEL_OK")
</pallas_src>

<mosaic_0001>
module attributes {stable_mosaic.version = 11 : i64} {
  func.func @_one_pixel_kernel(%arg0: i32, %arg1: memref<8x84xf32, #tpu.memory_space<vmem>>, %arg2: memref<84x42xf32, #tpu.memory_space<vmem>>, %arg3: memref<1x42xf32, #tpu.memory_space<vmem>>, %arg4: memref<84x42xf32, #tpu.memory_space<vmem>>, %arg5: memref<1x42xf32, #tpu.memory_space<vmem>>, %arg6: memref<42x42xf32, #tpu.memory_space<vmem>>, %arg7: memref<42x42xf32, #tpu.memory_space<vmem>>, %arg8: memref<42x42xf32, #tpu.memory_space<vmem>>, %arg9: memref<1x42xf32, #tpu.memory_space<vmem>>, %arg10: memref<1x42xf32, #tpu.memory_space<vmem>>, %arg11: memref<1x42xf32, #tpu.memory_space<vmem>>, %arg12: memref<8x1xf32, #tpu.memory_space<vmem>>, %arg13: memref<1x1xf32, #tpu.memory_space<vmem>>) attributes {dimension_semantics = [#tpu.dimension_semantics<arbitrary>], iteration_bounds = array<i64: 1>, scalar_prefetch = 0 : i64, scratch_operands = 0 : i64, tpu.core_type = #tpu.core_type<tc>, window_params = [{transform_indices = @transform_0, window_bounds = array<i64: 8, 84>}, {pipeline_mode = #tpu.pipeline_mode<synchronous>, transform_indices = @transform_1, window_bounds = array<i64: 84, 42>}, {pipeline_mode = #tpu.pipeline_mode<synchronous>, transform_indices = @transform_2, window_bounds = array<i64: 1, 42>}, {pipeline_mode = #tpu.pipeline_mode<synchronous>, transform_indices = @transform_3, window_bounds = array<i64: 84, 42>}, {pipeline_mode = #tpu.pipeline_mode<synchronous>, transform_indices = @transform_4, window_bounds = array<i64: 1, 42>}, {pipeline_mode = #tpu.pipeline_mode<synchronous>, transform_indices = @transform_5, window_bounds = array<i64: 42, 42>}, {pipeline_mode = #tpu.pipeline_mode<synchronous>, transform_indices = @transform_6, window_bounds = array<i64: 42, 42>}, {pipeline_mode = #tpu.pipeline_mode<synchronous>, transform_indices = @transform_7, window_bounds = array<i64: 42, 42>}, {pipeline_mode = #tpu.pipeline_mode<synchronous>, transform_indices = @transform_8, window_bounds = array<i64: 1, 42>}, {pipeline_mode = #tpu.pipeline_mode<synchronous>, transform_indices = @transform_9, window_bounds = array<i64: 1, 42>}, {pipeline_mode = #tpu.pipeline_mode<synchronous>, transform_indices = @transform_10, window_bounds = array<i64: 1, 42>}, {transform_indices = @transform_11, window_bounds = array<i64: 8, 1>}, {pipeline_mode = #tpu.pipeline_mode<synchronous>, transform_indices = @transform_12, window_bounds = array<i64: 1, 1>}]} {
    %c0 = arith.constant 0 : index
    %c0_0 = arith.constant 0 : index
    %0 = vector.load %arg6[%c0, %c0_0] : memref<42x42xf32, #tpu.memory_space<vmem>>, vector<42x42xf32>
    %c0_1 = arith.constant 0 : index
    %c0_2 = arith.constant 0 : index
    %1 = vector.load %arg7[%c0_1, %c0_2] : memref<42x42xf32, #tpu.memory_space<vmem>>, vector<42x42xf32>
    %c0_3 = arith.constant 0 : index
    %c0_4 = arith.constant 0 : index
    %2 = vector.load %arg8[%c0_3, %c0_4] : memref<42x42xf32, #tpu.memory_space<vmem>>, vector<42x42xf32>
    %c0_5 = arith.constant 0 : index
    %c0_6 = arith.constant 0 : index
    %3 = vector.load %arg9[%c0_5, %c0_6] : memref<1x42xf32, #tpu.memory_space<vmem>>, vector<1x42xf32>
    %c0_7 = arith.constant 0 : index
    %c0_8 = arith.constant 0 : index
    %4 = vector.load %arg10[%c0_7, %c0_8] : memref<1x42xf32, #tpu.memory_space<vmem>>, vector<1x42xf32>
    %c0_9 = arith.constant 0 : index
    %c0_10 = arith.constant 0 : index
    %5 = vector.load %arg11[%c0_9, %c0_10] : memref<1x42xf32, #tpu.memory_space<vmem>>, vector<1x42xf32>
    %cst = arith.constant 0.000000e+00 : f32
    %6 = vector.broadcast %cst : f32 to vector<42x42xf32>
    %7 = arith.maximumf %1, %6 : vector<42x42xf32>
    %8 = vector.broadcast %cst : f32 to vector<42x42xf32>
    %9 = arith.subf %1, %8 : vector<42x42xf32>
    %10 = arith.cmpf one, %9, %9 : vector<42x42xf32>
    %11 = vector.broadcast %cst : f32 to vector<42x42xf32>
    %12 = arith.addf %1, %11 : vector<42x42xf32>
    %13 = math.absf %9 : vector<42x42xf32>
    %cst_11 = arith.constant 0.000000e+00 : f32
    %14 = vector.broadcast %cst_11 : f32 to vector<42x42xf32>
    %15 = arith.subf %14, %13 : vector<42x42xf32>
    %16 = math.exp %15 : vector<42x42xf32>
    %17 = math.log1p %16 : vector<42x42xf32>
    %18 = arith.addf %7, %17 : vector<42x42xf32>
    %19 = arith.select %10, %12, %18 : vector<42x42xi1>, vector<42x42xf32>
    %cst_12 = arith.constant 0.000000e+00 : f32
    %20 = vector.broadcast %cst_12 : f32 to vector<1x42xf32>
    %21 = arith.maximumf %4, %20 : vector<1x42xf32>
    %22 = vector.broadcast %cst_12 : f32 to vector<1x42xf32>
    %23 = arith.subf %4, %22 : vector<1x42xf32>
    %24 = arith.cmpf one, %23, %23 : vector<1x42xf32>
    %25 = vector.broadcast %cst_12 : f32 to vector<1x42xf32>
    %26 = arith.addf %4, %25 : vector<1x42xf32>
    %27 = math.absf %23 : vector<1x42xf32>
    %cst_13 = arith.constant 0.000000e+00 : f32
    %28 = vector.broadcast %cst_13 : f32 to vector<1x42xf32>
    %29 = arith.subf %28, %27 : vector<1x42xf32>
    %30 = math.exp %29 : vector<1x42xf32>
    %31 = math.log1p %30 : vector<1x42xf32>
    %32 = arith.addf %21, %31 : vector<1x42xf32>
    %33 = arith.select %24, %26, %32 : vector<1x42xi1>, vector<1x42xf32>
    %34 = arith.mulf %19, %2 : vector<42x42xf32>
    %35 = arith.addf %0, %34 : vector<42x42xf32>
    %36 = arith.mulf %33, %5 : vector<1x42xf32>
    %37 = arith.addf %3, %36 : vector<1x42xf32>
    %c0_14 = arith.constant 0 : index
    %c0_15 = arith.constant 0 : index
    %38 = vector.load %arg1[%c0_14, %c0_15] : memref<8x84xf32, #tpu.memory_space<vmem>>, vector<8x84xf32>
    %c0_16 = arith.constant 0 : index
    %c0_17 = arith.constant 0 : index
    %39 = vector.load %arg2[%c0_16, %c0_17] : memref<84x42xf32, #tpu.memory_space<vmem>>, vector<84x42xf32>
    %cst_18 = arith.constant dense<0.000000e+00> : vector<8x42xf32>
    %40 = tpu.matmul %38, %39, %cst_18 {dimension_numbers = #tpu.dot_dimension_numbers<[1], [0], [0], [1], [0, 0, 1, 1], [], []>} : vector<8x84xf32>, vector<84x42xf32>, vector<8x42xf32> -> vector<8x42xf32>
    %c0_19 = arith.constant 0 : index
    %c0_20 = arith.constant 0 : index
    %41 = vector.load %arg3[%c0_19, %c0_20] : memref<1x42xf32, #tpu.memory_space<vmem>>, vector<1x42xf32>
    %42 = vector.broadcast %41 : vector<1x42xf32> to vector<8x42xf32>
    %43 = arith.addf %40, %42 : vector<8x42xf32>
    %c0_21 = arith.constant 0 : index
    %c0_22 = arith.constant 0 : index
    %44 = vector.load %arg4[%c0_21, %c0_22] : memref<84x42xf32, #tpu.memory_space<vmem>>, vector<84x42xf32>
    %cst_23 = arith.constant dense<0.000000e+00> : vector<8x42xf32>
    %45 = tpu.matmul %38, %44, %cst_23 {dimension_numbers = #tpu.dot_dimension_numbers<[1], [0], [0], [1], [0, 0, 1, 1], [], []>} : vector<8x84xf32>, vector<84x42xf32>, vector<8x42xf32> -> vector<8x42xf32>
    %c0_24 = arith.constant 0 : index
    %c0_25 = arith.constant 0 : index
    %46 = vector.load %arg5[%c0_24, %c0_25] : memref<1x42xf32, #tpu.memory_space<vmem>>, vector<1x42xf32>
    %47 = vector.broadcast %46 : vector<1x42xf32> to vector<8x42xf32>
    %48 = arith.addf %45, %47 : vector<8x42xf32>
    %cst_26 = arith.constant dense<0.000000e+00> : vector<8x42xf32>
    %49 = tpu.matmul %43, %35, %cst_26 {dimension_numbers = #tpu.dot_dimension_numbers<[1], [0], [0], [1], [0, 0, 1, 1], [], []>} : vector<8x42xf32>, vector<42x42xf32>, vector<8x42xf32> -> vector<8x42xf32>
    %50 = vector.broadcast %37 : vector<1x42xf32> to vector<8x42xf32>
    %51 = arith.addf %49, %50 : vector<8x42xf32>
    %52 = arith.addf %51, %48 : vector<8x42xf32>
    %cst_27 = arith.constant dense<0.000000e+00> : vector<8xf32>
    %53 = vector.multi_reduction <add>, %52, %cst_27 [1] : vector<8x42xf32> to vector<8xf32>
    %54 = vector.shape_cast %53 : vector<8xf32> to vector<8x1xf32>
    %cst_28 = arith.constant 0.0238095243 : f32
    %55 = vector.broadcast %cst_28 : f32 to vector<8x1xf32>
    %56 = arith.mulf %54, %55 : vector<8x1xf32>
    %c0_29 = arith.constant 0 : index
    %c0_30 = arith.constant 0 : index
    %57 = vector.load %arg12[%c0_29, %c0_30] : memref<8x1xf32, #tpu.memory_space<vmem>>, vector<8x1xf32>
    tpu.vector_store %arg12[%c0_29, %c0_30], %56 {strides = array<i32>} : memref<8x1xf32, #tpu.memory_space<vmem>>, vector<8x1xf32>,
    %c0_i32 = arith.constant 0 : i32
    %58 = arith.cmpi eq, %arg0, %c0_i32 : i32
    %59 = arith.extui %58 : i1 to i32
    %c0_i32_31 = arith.constant 0 : i32
    %60 = arith.cmpi ne, %59, %c0_i32_31 : i32
    scf.if %60 {
      %61 = math.log %19 : vector<42x42xf32>
      %cst_32 = arith.constant 0.000000e+00 : f32
      %62 = vector.broadcast %cst_32 : f32 to vector<42x42xf32>
      %63 = arith.subf %62, %61 : vector<42x42xf32>
      %64 = arith.mulf %19, %19 : vector<42x42xf32>
      %65 = arith.mulf %0, %0 : vector<42x42xf32>
      %66 = arith.addf %64, %65 : vector<42x42xf32>
      %cst_33 = arith.constant 5.000000e-01 : f32
      %67 = vector.broadcast %cst_33 : f32 to vector<42x42xf32>
      %68 = arith.mulf %67, %66 : vector<42x42xf32>
      %69 = arith.addf %63, %68 : vector<42x42xf32>
      %cst_34 = arith.constant 5.000000e-01 : f32
      %70 = vector.broadcast %cst_34 : f32 to vector<42x42xf32>
      %71 = arith.subf %69, %70 : vector<42x42xf32>
      %72 = math.log %33 : vector<1x42xf32>
      %cst_35 = arith.constant 0.000000e+00 : f32
      %73 = vector.broadcast %cst_35 : f32 to vector<1x42xf32>
      %74 = arith.subf %73, %72 : vector<1x42xf32>
      %75 = arith.mulf %33, %33 : vector<1x42xf32>
      %76 = arith.mulf %3, %3 : vector<1x42xf32>
      %77 = arith.addf %75, %76 : vector<1x42xf32>
      %cst_36 = arith.constant 5.000000e-01 : f32
      %78 = vector.broadcast %cst_36 : f32 to vector<1x42xf32>
      %79 = arith.mulf %78, %77 : vector<1x42xf32>
      %80 = arith.addf %74, %79 : vector<1x42xf32>
      %cst_37 = arith.constant 5.000000e-01 : f32
      %81 = vector.broadcast %cst_37 : f32 to vector<1x42xf32>
      %82 = arith.subf %80, %81 : vector<1x42xf32>
      %83 = vector.shape_cast %71 : vector<42x42xf32> to vector<1x42x42xf32>
      %cst_38 = arith.constant dense<0.000000e+00> : vector<1xf32>
      %84 = vector.multi_reduction <add>, %83, %cst_38 [1, 2] : vector<1x42x42xf32> to vector<1xf32>
      %85 = vector.shape_cast %84 : vector<1xf32> to vector<1x1x1xf32>
      %86 = vector.extract %85[0, 0, 0] : f32 from vector<1x1x1xf32>
      %87 = vector.broadcast %86 : f32 to vector<1x1xf32>
      %cst_39 = arith.constant 1.764000e+03 : f32
      %88 = vector.broadcast %cst_39 : f32 to vector<1x1xf32>
      %89 = arith.divf %87, %88 : vector<1x1xf32>
      %90 = vector.shape_cast %82 : vector<1x42xf32> to vector<1x1x42xf32>
      %cst_40 = arith.constant dense<0.000000e+00> : vector<1xf32>
      %91 = vector.multi_reduction <add>, %90, %cst_40 [1, 2] : vector<1x1x42xf32> to vector<1xf32>
      %92 = vector.shape_cast %91 : vector<1xf32> to vector<1x1x1xf32>
      %93 = vector.extract %92[0, 0, 0] : f32 from vector<1x1x1xf32>
      %94 = vector.broadcast %93 : f32 to vector<1x1xf32>
      %cst_41 = arith.constant 4.200000e+01 : f32
      %95 = vector.broadcast %cst_41 : f32 to vector<1x1xf32>
      %96 = arith.divf %94, %95 : vector<1x1xf32>
      %97 = arith.addf %89, %96 : vector<1x1xf32>
      %c0_42 = arith.constant 0 : index
      %c0_43 = arith.constant 0 : index
      %98 = vector.load %arg13[%c0_42, %c0_43] : memref<1x1xf32, #tpu.memory_space<vmem>>, vector<1x1xf32>
      tpu.vector_store %arg13[%c0_42, %c0_43], %97 {strides = array<i32>} : memref<1x1xf32, #tpu.memory_space<vmem>>, vector<1x1xf32>,
    } else {
    }
    return
  }
  func.func @transform_0(%arg0: i32) -> (i32, i32) {
    %c0_i32 = arith.constant 0 : i32
    %c0_i32_0 = arith.constant 0 : i32
    return %arg0, %c0_i32 : i32, i32
  }
  func.func @transform_1(%arg0: i32) -> (i32, i32) {
    %c0_i32 = arith.constant 0 : i32
    %c0_i32_0 = arith.constant 0 : i32
    %c0_i32_1 = arith.constant 0 : i32
    return %c0_i32, %c0_i32_0 : i32, i32
  }
  func.func @transform_2(%arg0: i32) -> (i32, i32) {
    %c0_i32 = arith.constant 0 : i32
    %c0_i32_0 = arith.constant 0 : i32
    %c0_i32_1 = arith.constant 0 : i32
    return %c0_i32, %c0_i32_0 : i32, i32
  }
  func.func @transform_3(%arg0: i32) -> (i32, i32) {
    %c0_i32 = arith.constant 0 : i32
    %c0_i32_0 = arith.constant 0 : i32
    %c0_i32_1 = arith.constant 0 : i32
    return %c0_i32, %c0_i32_0 : i32, i32
  }
  func.func @transform_4(%arg0: i32) -> (i32, i32) {
    %c0_i32 = arith.constant 0 : i32
    %c0_i32_0 = arith.constant 0 : i32
    %c0_i32_1 = arith.constant 0 : i32
    return %c0_i32, %c0_i32_0 : i32, i32
  }
  func.func @transform_5(%arg0: i32) -> (i32, i32) {
    %c0_i32 = arith.constant 0 : i32
    %c0_i32_0 = arith.constant 0 : i32
    %c0_i32_1 = arith.constant 0 : i32
    return %c0_i32, %c0_i32_0 : i32, i32
  }
  func.func @transform_6(%arg0: i32) -> (i32, i32) {
    %c0_i32 = arith.constant 0 : i32
    %c0_i32_0 = arith.constant 0 : i32
    %c0_i32_1 = arith.constant 0 : i32
    return %c0_i32, %c0_i32_0 : i32, i32
  }
  func.func @transform_7(%arg0: i32) -> (i32, i32) {
    %c0_i32 = arith.constant 0 : i32
    %c0_i32_0 = arith.constant 0 : i32
    %c0_i32_1 = arith.constant 0 : i32
    return %c0_i32, %c0_i32_0 : i32, i32
  }
  func.func @transform_8(%arg0: i32) -> (i32, i32) {
    %c0_i32 = arith.constant 0 : i32
    %c0_i32_0 = arith.constant 0 : i32
    %c0_i32_1 = arith.constant 0 : i32
    return %c0_i32, %c0_i32_0 : i32, i32
  }
  func.func @transform_9(%arg0: i32) -> (i32, i32) {
    %c0_i32 = arith.constant 0 : i32
    %c0_i32_0 = arith.constant 0 : i32
    %c0_i32_1 = arith.constant 0 : i32
    return %c0_i32, %c0_i32_0 : i32, i32
  }
  func.func @transform_10(%arg0: i32) -> (i32, i32) {
    %c0_i32 = arith.constant 0 : i32
    %c0_i32_0 = arith.constant 0 : i32
    %c0_i32_1 = arith.constant 0 : i32
    return %c0_i32, %c0_i32_0 : i32, i32
  }
  func.func @transform_11(%arg0: i32) -> (i32, i32) {
    %c0_i32 = arith.constant 0 : i32
    %c0_i32_0 = arith.constant 0 : i32
    return %arg0, %c0_i32 : i32, i32
  }
  func.func @transform_12(%arg0: i32) -> (i32, i32) {
    %c0_i32 = arith.constant 0 : i32
    %c0_i32_0 = arith.constant 0 : i32
    %c0_i32_1 = arith.constant 0 : i32
    return %c0_i32, %c0_i32_0 : i32, i32
  }
}

</mosaic_0001>

<bundles_post_ra>
// kernel: one_pixel_forward.1
= control target key start
LH: loop header
LB: loop body
LE: loop exit
PB: predicated region body
PF: predicated region fallthrough
CT: control target
= control target key end

     0   :  { %v837_v3 = vmov 0.0|0.0   ;;  %vm838_vm0 = vmmov 0   ;;  %v839_v6 = vmov 0.0   ;;  %s1181_s0 = inlined_call_operand.vmem [shape: f32[8,84], index: 0, kind: input, shape index: {}]   ;;  %s1182_s1 = inlined_call_operand.vmem [shape: f32[84,42], index: 1, kind: input, shape index: {}]   ;;  %s1183_s2 = inlined_call_operand.vmem [shape: f32[1,42], index: 2, kind: input, shape index: {}]   ;;  %s1184_s3 = inlined_call_operand.vmem [shape: f32[84,42], index: 3, kind: input, shape index: {}]   ;;  %s1185_s4 = inlined_call_operand.vmem [shape: f32[1,42], index: 4, kind: input, shape index: {}]   ;;  %s1186_s5 = inlined_call_operand.vmem [shape: f32[42,42], index: 5, kind: input, shape index: {}]   ;;  %s1187_s6 = inlined_call_operand.vmem [shape: f32[42,42], index: 6, kind: input, shape index: {}]   ;;  %s1188_s7 = inlined_call_operand.vmem [shape: f32[42,42], index: 7, kind: input, shape index: {}]   ;;  %s1189_s8 = inlined_call_operand.vmem [shape: f32[1,42], index: 8, kind: input, shape index: {}]   ;;  %s1190_s9 = inlined_call_operand.vmem [shape: f32[1,42], index: 9, kind: input, shape index: {}]   ;;  %s1191_s10 = inlined_call_operand.vmem [shape: f32[1,42], index: 10, kind: input, shape index: {}]   ;;  %s1192_s11 = inlined_call_operand.vmem [shape: f32[8,1], index: 11, kind: output, shape index: {0}]   ;;  %s1193_s12 = inlined_call_operand.hbm [shape: f32[1,1], index: 12, kind: output, shape index: {1}]  }
   0x1   :  { %v203_v0 = vld [vmem:[%s1182_s1] sm:$0xff]  ;;  %v204_v1 = vld [vmem:[%s1182_s1 + $0x8] sm:$0xff]  ;;  %v205_v2 = vld [vmem:[%s1182_s1 + $0x10] sm:$0xff]  ;;  %718 = vmatprep.subr.bf16.mxu0 %v837_v3  ;;  %733 = vmatprep.subr.bf16.mxu1 %v837_v3 }
   0x2   :  { %v719_v4 = vpack.c.bf16 %v204_v1, %v203_v0  ;;  %v206_v5 = vld [vmem:[%s1182_s1 + $0x18] sm:$0xff]  ;;  %675 = vmatprep.mubr.msk.f32.mxu0 %vm838_vm0, %v839_v6  ;;  %700 = vmatprep.mubr.msk.f32.mxu1 %vm838_vm0, %v839_v6  ;;  %v207_v8 = vld [vmem:[%s1182_s1 + $0x20] sm:$0xff]  ;;  %v208_v9 = vld [vmem:[%s1182_s1 + $0x28] sm:$0xff] }
   0x3   :  { %v722_v7 = vpack.c.bf16 %v206_v5, %v205_v2  ;;  %v299_v10 = vld [vmem:[%s1184_s3] sm:$0xff]  ;;  %v300_v11 = vld [vmem:[%s1184_s3 + $0x8] sm:$0xff]  ;;  %v301_v12 = vld [vmem:[%s1184_s3 + $0x10] sm:$0xff]  ;;  %v725_v15 = vpack.c.bf16 %v208_v9, %v207_v8 }
   0x4   :  { %720 = vmatpush3.bf16.msra.mxu0 %v719_v4  ;;  %v734_v13 = vpack.c.bf16 %v300_v11, %v299_v10  ;;  %v302_v14 = vld [vmem:[%s1184_s3 + $0x18] sm:$0xff]  ;;  %v209_v16 = vld [vmem:[%s1182_s1 + $0x30] sm:$0xff]  ;;  %v303_v19 = vld [vmem:[%s1184_s3 + $0x20] sm:$0xff] }
   0x5   :  { %721 = vmatprep.subr.bf16.mxu0 %v837_v3  ;;  %v210_v17 = vld [vmem:[%s1182_s1 + $0x38] sm:$0xff]  ;;  %v737_v18 = vpack.c.bf16 %v302_v14, %v301_v12  ;;  %v304_v20 = vld [vmem:[%s1184_s3 + $0x28] sm:$0xff]  ;;  %v961_v21 = vld [vmem:[%s1187_s6] sm:$0xff] }
   0x6   :  { %735 = vmatpush3.bf16.msra.mxu1 %v734_v13  ;;  %v966_v22 = vld [vmem:[%s1187_s6 + $0x8] sm:$0xff]  ;;  %v80_v23 = vand.u32 2147483647, %v961_v21  ;;  %v973_v25 = vld [vmem:[%s1187_s6 + $0x10] sm:$0xff]  ;;  %v728_v26 = vpack.c.bf16 %v210_v17, %v209_v16  ;;  %v211_v27 = vld [vmem:[%s1182_s1 + $0x40] sm:$0xff]  ;;  %v740_v28 = vpack.c.bf16 %v304_v20, %v303_v19 }
   0x7   :  { %736 = vmatprep.subr.bf16.mxu1 %v837_v3  ;;  %v81_v24 = vand.u32 2147483647, %v966_v22  ;;  %v981_v29 = vld [vmem:[%s1187_s6 + $0x18] sm:$0xff]  ;;  %v82_v30 = vand.u32 2147483647, %v973_v25  ;;  %v212_v31 = vld [vmem:[%s1182_s1 + $0x48] sm:$0xff] }
   0x8   :  { %723 = vmatpush3.bf16.msra.mxu0 %v722_v7  ;;  %v305_v32 = vld [vmem:[%s1184_s3 + $0x30] sm:$0xff]  ;;  %v306_v33 = vld [vmem:[%s1184_s3 + $0x38] sm:$0xff]  ;;  %v86_v34 = vsub.f32 0.0, %v80_v23  ;;  %v83_v36 = vand.u32 2147483647, %v981_v29 }
   0x9   :  { %724 = vmatprep.subr.bf16.mxu0 %v837_v3  ;;  %v87_v35 = vsub.f32 0.0, %v81_v24  ;;  %v88_v37 = vsub.f32 0.0, %v82_v30 }
   0xa   :  { %738 = vmatpush3.bf16.msra.mxu1 %v737_v18 }
   0xb   :  { %739 = vmatprep.subr.bf16.mxu1 %v837_v3 }
   0xc   :  { %726 = vmatpush3.bf16.msra.mxu0 %v725_v15 }
   0xd   :  { %727 = vmatprep.subr.bf16.mxu0 %v837_v3 }
   0xe   :  { %18 = vsyncpa [#allocation3], 0  ;;  %v92_v38 = vmul.f32 1.442695, %v86_v34  ;;  %v94_v39 = vmul.f32 1.442695, %v87_v35  ;;  %v731_v40 = vpack.c.bf16 %v212_v31, %v211_v27  ;;  %741 = vmatpush3.bf16.msra.mxu1 %v740_v28  ;;  %v743_v41 = vpack.c.bf16 %v306_v33, %v305_v32 }
   0xf   :  { %v89_v42 = vsub.f32 0.0, %v83_v36  ;;  %v96_v43 = vmul.f32 1.442695, %v88_v37  ;;  %742 = vmatprep.subr.bf16.mxu1 %v837_v3  ;;  %v307_v44 = vld [vmem:[%s1184_s3 + $0x40] sm:$0xff]  ;;  %v308_v45 = vld [vmem:[%s1184_s3 + $0x48] sm:$0xff]  ;;  %vm225_vm1 = vcmask 1043456   ;;  %vm68_vm6 = vcmp.ne.f32.partialorder %v961_v21, %v961_v21 }
  0x10   :  { %729 = vmatpush3.bf16.msra.mxu0 %v728_v26  ;;  %771 = vpow2.f32 %v92_v38  ;;  %v746_v47 = vpack.c.bf16 %v308_v45, %v307_v44  ;;  %v213_v48 = vld [vmem:[%s1182_s1 + $0x50] sm:$0xf]  ;;  %v202_v49 = vld [vmem:[%s1181_s0] sm:$0xff]  ;;  %vm221_vm2 = vcmask 687104   ;;  %v62_v7 = vmax.f32 %v961_v21, 0.0  ;;  %v42_v36 = vld [vmem:[%s1186_s5 + $0x8] sm:$0xff] }
  0x11   :  { %730 = vmatprep.subr.bf16.mxu0 %v837_v3  ;;  %773 = vpow2.f32 %v94_v39  ;;  %v98_v46 = vmul.f32 1.442695, %v89_v42  ;;  %v309_v50 = vld [vmem:[%s1184_s3 + $0x50] sm:$0xf]  ;;  %v63_v10 = vmax.f32 %v966_v22, 0.0  ;;  %v64_v24 = vmax.f32 %v973_v25, 0.0 }
  0x12   :  { %775 = vpow2.f32 %v96_v43  ;;  %744 = vmatpush3.bf16.msra.mxu1 %v743_v41  ;;  %vm69_vm7 = vcmp.ne.f32.partialorder %v966_v22, %v966_v22  ;;  %v53_v31 = vld [vmem:[%s1188_s7] sm:$0xff]  ;;  %v65_v34 = vmax.f32 %v981_v29, 0.0  ;;  %v54_v37 = vld [vmem:[%s1188_s7 + $0x8] sm:$0xff]  ;;  %v510_v43 = vmul.f32 %v42_v36, %v42_v36  ;;  %s841_s30 = smov [#allocation2]  }
  0x13   :  { %777 = vpow2.f32 %v98_v46  ;;  %745 = vmatprep.subr.bf16.mxu1 %v837_v3  ;;  %vm70_vm9 = vcmp.ne.f32.partialorder %v973_v25, %v973_v25  ;;  %vm71_vm10 = vcmp.ne.f32.partialorder %v981_v29, %v981_v29  ;;  %vm400_vm15 = vcmask 1041408   ;;  %s597_s13 = sshll.u32 %s841_s30, 4  ;;  %s598_s13 = int_to_ptr.vmem [resolvable:$true] %s597_s13 }
  0x14   :  { %732 = vmatpush3.bf16.msra.mxu0 %v731_v40  ;;  %s813_s14 = scalar_lea.vmem %s598_s13, 16  ;;  %p818_p1 = scmp.lt.s32.totalorder %s598_s13, %s598_s13 }
  0x15   :  { %673 = vmatprep.subr.mxu0 %v839_v6  ;;  %p814_p0 = scmp.ne.s32.totalorder %s598_s13, %s813_s14 }
  0x16   :  { %747 = vmatpush3.bf16.msra.mxu1 %v746_v47 }
  0x17   :  { %698 = vmatprep.subr.mxu1 %v839_v6 }
  0x18   :  { %674 = vmatpush3.msk.msra.mxu0 %vm225_vm1, %v213_v48  ;;  %v55_v48 = vld [vmem:[%s1188_s7 + $0x10] sm:$0xff] }
  0x19   :  { %676 = vmatmul.mubr.msk.f32.vlgmr.msra.gmra.mrb[0].mxu0 %vm221_vm2, %v202_v49 }
  0x1a   :  { %v772_v51 = vpop.eup %771  ;;  %699 = vmatpush3.msk.msra.mxu1 %vm225_vm1, %v309_v50 }
  0x1b   :  { %v774_v52 = vpop.eup %773  ;;  %v104_v53 = vadd.f32 1.0, %v772_v51  ;;  %748 = vmatprep.subr.bf16.mxu1 %v837_v3  ;;  %701 = vmatmul.mubr.msk.f32.vlgmr.msra.gmra.mrb[0].mxu1 %vm221_vm2, %v202_v49  ;;  %v107_v58 = vmul.f32 -0.5, %v772_v51  ;;  %v110_v63 = vand.u32 2147483647, %v772_v51  ;;  %vm396_vm2 = vcmask 343040  }
  0x1c   :  { %v776_v54 = vpop.eup %775  ;;  %v113_v55 = vadd.f32 1.0, %v774_v52  ;;  %715 = vmatprep.mubr.msk.f32.mxu1 %vm838_vm0, %v839_v6  ;;  %v116_v59 = vmul.f32 -0.5, %v774_v52  ;;  %v119_v2 = vand.u32 2147483647, %v774_v52  ;;  %v41_v6 = vld [vmem:[%s1186_s5] sm:$0xff]  ;;  %vm840_vm0 = vmmov 1  }
  0x1d   :  { %v778_v56 = vpop.eup %777  ;;  %779 = vlog2.f32 %v104_v53  ;;  %v122_v57 = vadd.f32 1.0, %v776_v54  ;;  %v125_v61 = vmul.f32 -0.5, %v776_v54  ;;  %v108_v62 = vadd.f32 1.0, %v107_v58  ;;  %v56_v53 = vld [vmem:[%s1188_s7 + $0x18] sm:$0xff]  ;;  %vm756_vm1 = vmpackc.low %vm400_vm15, %vm840_vm0 }
  0x1e   :  { %781 = vlog2.f32 %v113_v55  ;;  %v131_v60 = vadd.f32 1.0, %v778_v56  ;;  %v117_v0 = vadd.f32 1.0, %v116_v59  ;;  %v134_v1 = vmul.f32 -0.5, %v778_v56  ;;  %v1097_v59 = vld [vmem:[%s1186_s5 + $0x18] sm:$0xff] }
  0x1f   :  { %783 = vlog2.f32 %v122_v57  ;;  %v126_v4 = vadd.f32 1.0, %v125_v61  ;;  %v128_v5 = vand.u32 2147483647, %v776_v54  ;;  %v109_v8 = vmul.f32 %v772_v51, %v108_v62 }
  0x20   :  { %785 = vlog2.f32 %v131_v60  ;;  %vm1024_vm3 = vcmp.lt.f32.partialorder %v110_v63, 0.0004427343  ;;  %v118_v12 = vmul.f32 %v774_v52, %v117_v0  ;;  %v135_v13 = vadd.f32 1.0, %v134_v1  ;;  %v51_v1 = vld [vmem:[%s1187_s6 + $0x20] sm:$0xff] }
  0x21   :  { %vm1028_vm4 = vcmp.lt.f32.partialorder %v119_v2, 0.0004427343  ;;  %v127_v17 = vmul.f32 %v776_v54, %v126_v4  ;;  %v137_v18 = vand.u32 2147483647, %v778_v56  ;;  %v509_v23 = vmul.f32 %v41_v6, %v41_v6 }
  0x22   :  { %vm1033_vm5 = vcmp.lt.f32.partialorder %v128_v5, 0.0004427343  ;;  %v136_v35 = vmul.f32 %v778_v56, %v135_v13  ;;  %v84_v2 = vand.u32 2147483647, %v51_v1  ;;  %v66_v26 = vmax.f32 %v51_v1, 0.0 }
  0x23   :  { %vm1057_vm8 = vcmp.lt.f32.partialorder %v137_v18, 0.0004427343  ;;  %vm72_vm13 = vcmp.ne.f32.partialorder %v51_v1, %v51_v1 }
  0x24   :  { %v90_v5 = vsub.f32 0.0, %v84_v2 }
  0x27   :  { %v780_v9 = vpop.eup %779 }
  0x28   :  { %v782_v14 = vpop.eup %781  ;;  %v106_v15 = vmul.f32 0.6931472, %v780_v9 }
  0x29   :  { %v784_v19 = vpop.eup %783  ;;  %v115_v20 = vmul.f32 0.6931472, %v782_v14 }
  0x2a   :  { %v112_v27 = vsel %vm1024_vm3, %v109_v8, %v106_v15  ;;  %v124_v28 = vmul.f32 0.6931472, %v784_v19  ;;  %v786_v30 = vpop.eup %785  ;;  %v100_v8 = vmul.f32 1.442695, %v90_v5  ;;  %vm557_vm3 = vcmask 336896  }
  0x2b   :  { %v121_v32 = vsel %vm1028_vm4, %v118_v12, %v115_v20  ;;  %v158_v33 = vadd.f32 %v112_v27, %v62_v7  ;;  %v133_v40 = vmul.f32 0.6931472, %v786_v30 }
  0x2c   :  { %v159_v38 = vadd.f32 %v121_v32, %v63_v10  ;;  %v130_v39 = vsel %vm1033_vm5, %v127_v17, %v124_v28  ;;  %787 = vpow2.f32 %v100_v8 }
  0x2d   :  { %v164_v42 = vsel %vm68_vm6, %v961_v21, %v158_v33  ;;  %v160_v44 = vadd.f32 %v130_v39, %v64_v24  ;;  %v139_v21 = vsel %vm1057_vm8, %v136_v35, %v133_v40  ;;  %v58_v35 = vld [vmem:[%s1188_s7 + $0x28] sm:$0x3]  ;;  %v45_v39 = vld [vmem:[%s1186_s5 + $0x20] sm:$0xff]  ;;  %vm572_vm6 = vcmask 335872  }
  0x2e   :  { %v165_v45 = vsel %vm69_vm7, %v966_v22, %v159_v38  ;;  %v188_v46 = vmul.f32 %v164_v42, %v53_v31  ;;  %v503_v47 = vmul.f32 %v164_v42, %v164_v42  ;;  %v1083_v22 = vld [vmem:[%s1186_s5 + $0x10] sm:$0xff]  ;;  %v161_v54 = vadd.f32 %v139_v21, %v65_v34  ;;  %v57_v34 = vld [vmem:[%s1188_s7 + $0x20] sm:$0xff]  ;;  %v46_v40 = vld [vmem:[%s1186_s5 + $0x28] sm:$0x3] }
  0x2f   :  { %v189_v49 = vmul.f32 %v165_v45, %v54_v37  ;;  %v504_v50 = vmul.f32 %v165_v45, %v165_v45  ;;  %v1089_v55 = vsel %vm70_vm9, %v973_v25, %v160_v44  ;;  %vm587_vm7 = vcmask 0  }
  0x30   :  { %v194_v51 = vadd.f32 %v188_v46, %v41_v6  ;;  %v1078_v52 = vadd.f32 %v509_v23, %v503_v47  ;;  %v190_v58 = vmul.f32 %v1089_v55, %v55_v48  ;;  %v1100_v60 = vsel %vm71_vm10, %v981_v29, %v161_v54  ;;  %v52_v29 = vld [vmem:[%s1187_s6 + $0x28] sm:$0x3] }
  0x31   :  { %v195_v56 = vadd.f32 %v189_v49, %v42_v36  ;;  %v1091_v57 = vadd.f32 %v510_v43, %v504_v50  ;;  %v191_v62 = vmul.f32 %v1100_v60, %v56_v53  ;;  %v85_v4 = vand.u32 2147483647, %v52_v29 }
  0x32   :  { %v196_v63 = vadd.f32 %v190_v58, %v1083_v22  ;;  %v67_v27 = vmax.f32 %v52_v29, 0.0  ;;  %vm73_vm14 = vcmp.ne.f32.partialorder %v52_v29, %v52_v29  ;;  %v511_v47 = vmul.f32 %v1083_v22, %v1083_v22 }
  0x33   :  { %v749_v61 = vpack.c.bf16 %v195_v56, %v194_v51  ;;  %v197_v25 = vadd.f32 %v191_v62, %v1097_v59  ;;  %v91_v7 = vsub.f32 0.0, %v85_v4  ;;  %v512_v48 = vmul.f32 %v1097_v59, %v1097_v59 }
  0x34   :  { %v505_v21 = vmul.f32 %v1089_v55, %v1089_v55  ;;  %v506_v51 = vmul.f32 %v1100_v60, %v1100_v60  ;;  %v521_v58 = vmul.f32 0.5, %v1078_v52  ;;  %v522_v59 = vmul.f32 0.5, %v1091_v57 }
  0x35   :  { %750 = vmatpush3.bf16.msra.mxu1 %v749_v61  ;;  %v752_v0 = vpack.c.bf16 %v197_v25, %v196_v63  ;;  %v102_v9 = vmul.f32 1.442695, %v91_v7  ;;  %v1140_v61 = vld [vmem:[%s1190_s9] sm:$0x1]  ;;  %v513_v62 = vmul.f32 %v45_v39, %v45_v39  ;;  %v514_v25 = vmul.f32 %v46_v40, %v46_v40 }
  0x36   :  { %751 = vmatprep.subr.bf16.mxu1 %v837_v3  ;;  %v788_v6 = vpop.eup %787  ;;  %v517_v22 = vadd.f32 %v511_v47, %v505_v21  ;;  %v518_v56 = vadd.f32 %v512_v48, %v506_v51  ;;  %v170_v21 = vmax.f32 %v1140_v61, 0.0  ;;  %vm171_vm5 = vcmp.ne.f32.partialorder %v1140_v61, %v1140_v61 }
  0x37   :  { %789 = vpow2.f32 %v102_v9  ;;  %v140_v11 = vadd.f32 1.0, %v788_v6  ;;  %v143_v12 = vmul.f32 -0.5, %v788_v6  ;;  %v146_v17 = vand.u32 2147483647, %v788_v6 }
  0x39   :  { %753 = vmatpush3.bf16.msra.mxu1 %v752_v0  ;;  %791 = vlog2.f32 %v140_v11  ;;  %v144_v14 = vadd.f32 1.0, %v143_v12  ;;  %vm147_vm11 = vcmp.lt.f32.partialorder %v146_v17, 0.0004427343 }
  0x3a   :  { %754 = vmatprep.subr.bf16.mxu1 %v837_v3 }
  0x3b   :  { %v145_v23 = vmul.f32 %v788_v6, %v144_v14  ;;  %v524_v14 = vmul.f32 0.5, %v518_v56 }
  0x41   :  { %v790_v10 = vpop.eup %789 }
  0x42   :  { %v149_v3 = vadd.f32 1.0, %v790_v10  ;;  %v152_v13 = vmul.f32 -0.5, %v790_v10  ;;  %v155_v18 = vand.u32 2147483647, %v790_v10 }
  0x43   :  { %v792_v16 = vpop.eup %791 }
  0x44   :  { %793 = vlog2.f32 %v149_v3  ;;  %v153_v15 = vadd.f32 1.0, %v152_v13  ;;  %v142_v20 = vmul.f32 0.6931472, %v792_v16  ;;  %vm156_vm12 = vcmp.lt.f32.partialorder %v155_v18, 0.0004427343 }
  0x45   :  { %795 = vlog2.f32 %v164_v42 }
  0x46   :  { %v154_v24 = vmul.f32 %v790_v10, %v153_v15  ;;  %797 = vlog2.f32 %v165_v45  ;;  %v148_v30 = vsel %vm147_vm11, %v145_v23, %v142_v20  ;;  %v523_v10 = vmul.f32 0.5, %v517_v22  ;;  %v61_v22 = vld [vmem:[%s1191_s10] sm:$0x1] }
  0x47   :  { %v162_v32 = vadd.f32 %v148_v30, %v66_v26  ;;  %799 = vlog2.f32 %v1089_v55 }
  0x48   :  { %801 = vlog2.f32 %v1100_v60 }
  0x49   :  { %v168_v36 = vsel %vm72_vm13, %v51_v1, %v162_v32  ;;  %v173_v1 = vand.u32 2147483647, %v1140_v61 }
  0x4a   :  { %v192_v38 = vmul.f32 %v168_v36, %v57_v34  ;;  %803 = vlog2.f32 %v168_v36  ;;  %v507_v55 = vmul.f32 %v168_v36, %v168_v36 }
  0x4b   :  { %v174_v52 = vsub.f32 0.0, %v173_v1 }
  0x4c   :  { %v198_v42 = vadd.f32 %v192_v38, %v45_v39  ;;  %v519_v4 = vadd.f32 %v513_v62, %v507_v55 }
  0x4d   :  { %v175_v3 = vmul.f32 1.442695, %v174_v52 }
  0x4e   :  { %v794_v19 = vpop.eup %793  ;;  %v525_v18 = vmul.f32 0.5, %v519_v4 }
  0x4f   :  { %v151_v28 = vmul.f32 0.6931472, %v794_v19  ;;  %v796_v44 = vpop.eup %795 }
  0x50   :  { %v798_v46 = vpop.eup %797  ;;  %v486_v49 = vmul.f32 0.6931472, %v796_v44 }
  0x51   :  { %v157_v31 = vsel %vm156_vm12, %v154_v24, %v151_v28  ;;  %v488_v50 = vmul.f32 0.6931472, %v798_v46  ;;  %v800_v5 = vpop.eup %799 }
  0x52   :  { %v163_v33 = vadd.f32 %v157_v31, %v67_v27  ;;  %v497_v53 = vsub.f32 0.0, %v486_v49  ;;  %v802_v9 = vpop.eup %801  ;;  %v490_v6 = vmul.f32 0.6931472, %v800_v5 }
  0x53   :  { %v498_v54 = vsub.f32 0.0, %v488_v50  ;;  %v492_v13 = vmul.f32 0.6931472, %v802_v9 }
  0x54   :  { %v169_v37 = vsel %vm73_vm14, %v52_v29, %v163_v33  ;;  %v527_v60 = vadd.f32 %v521_v58, %v497_v53  ;;  %v804_v12 = vpop.eup %803  ;;  %v499_v17 = vsub.f32 0.0, %v490_v6  ;;  %v59_v58 = vld [vmem:[%s1189_s8] sm:$0x1] }
  0x55   :  { %v193_v41 = vmul.f32 %v169_v37, %v58_v35  ;;  %805 = vlog2.f32 %v169_v37  ;;  %v508_v63 = vmul.f32 %v169_v37, %v169_v37  ;;  %v528_v0 = vadd.f32 %v522_v59, %v498_v54 }
  0x56   :  { %v615_v29 = vadd.f32 -0.5, %v527_v60  ;;  %v494_v16 = vmul.f32 0.6931472, %v804_v12  ;;  %807 = vpow2.f32 %v175_v3  ;;  %v500_v20 = vsub.f32 0.0, %v492_v13 }
  0x57   :  { %v199_v43 = vadd.f32 %v193_v41, %v46_v40  ;;  %v616_v2 = vadd.f32 -0.5, %v528_v0  ;;  %v520_v57 = vadd.f32 %v514_v25, %v508_v63  ;;  %v529_v26 = vadd.f32 %v523_v10, %v499_v17 }
  0x58   :  { %v548_v7 = vsel %vm396_vm2, %v615_v29, 0.0  ;;  %v501_v24 = vsub.f32 0.0, %v494_v16  ;;  %v530_v28 = vadd.f32 %v524_v14, %v500_v20  ;;  %v543_v63 = vmul.f32 %v59_v58, %v59_v58 }
  0x59   :  { %v755_v45 = vpack.c.bf16 %v199_v43, %v198_v42  ;;  %v549_v8 = vsel %vm396_vm2, %v616_v2, 0.0  ;;  %v526_v23 = vmul.f32 0.5, %v520_v57  ;;  %v617_v31 = vadd.f32 -0.5, %v529_v26 }
  0x5a   :  { %v550_v11 = vadd.f32 %v549_v8, %v548_v7  ;;  %v531_v30 = vadd.f32 %v525_v18, %v501_v24  ;;  %v618_v33 = vadd.f32 -0.5, %v530_v28  ;;  %v391_v20 = vlaneseq }
  0x5b   :  { %757 = vmatpush3.bf16.msk.msra.mxu1 %vm756_vm1, %v755_v45  ;;  %v551_v35 = vsel %vm396_vm2, %v617_v31, 0.0 }
  0x5c   :  { %v619_v34 = vadd.f32 -0.5, %v531_v30  ;;  %v552_v37 = vadd.f32 %v551_v35, %v550_v11  ;;  %v553_v38 = vsel %vm396_vm2, %v618_v33, 0.0 }
  0x5e   :  { %v555_v39 = vsel %vm396_vm2, %v619_v34, 0.0  ;;  %v554_v40 = vadd.f32 %v553_v38, %v552_v37 }
  0x5f   :  { %v806_v15 = vpop.eup %805 }
  0x60   :  { %v496_v19 = vmul.f32 0.6931472, %v806_v15  ;;  %v808_v41 = vpop.eup %807  ;;  %v556_v43 = vadd.f32 %v555_v39, %v554_v40 }
  0x61   :  { %v177_v44 = vadd.f32 1.0, %v808_v41  ;;  %v180_v46 = vmul.f32 -0.5, %v808_v41  ;;  %v183_v48 = vand.u32 2147483647, %v808_v41 }
  0x62   :  { %v502_v27 = vsub.f32 0.0, %v496_v19 }
  0x63   :  { %809 = vlog2.f32 %v177_v44  ;;  %v181_v47 = vadd.f32 1.0, %v180_v46  ;;  %vm184_vm4 = vcmp.lt.f32.partialorder %v183_v48, 0.0004427343 }
  0x64   :  { %v532_v32 = vadd.f32 %v526_v23, %v502_v27  ;;  %v392_v23 = vshrl.u32 %v391_v20, 7  ;;  %v610_v27 = vld [vmem:[%s1185_s4] ss:$0 sm:$0xff]  ;;  %s817_s4 = scalar_lea.vmem %s598_s13, 32 }
  0x65   :  { %v182_v49 = vmul.f32 %v808_v41, %v181_v47  ;;  %p819_p2 = scmp.lt.s32.totalorder %s817_s4, %s813_s14 }
  0x66   :  { %v620_v36 = vadd.f32 -0.5, %v532_v32  ;;  %v393_v24 = vsub.s32 0, %v392_v23 }
  0x67   :  { %p820_p3 = por %p819_p2, %p818_p1 }
  0x68   :  { %v558_v42 = vsel %vm557_vm3, %v620_v36, 0.0 }
  0x69   :  { %v559_v45 = vadd.f32 %v558_v42, %v556_v43  ;;  %p821_p4 = pnand %p820_p3, %p814_p0 }
  0x6b   :  { %560 = vadd.xlane.f32.xlu0 %v559_v45 }
  0x6d   :  { %v810_v50 = vpop.eup %809 }
  0x6e   :  { %v179_v51 = vmul.f32 0.6931472, %v810_v50 }
  0x70   :  { %v185_v53 = vsel %vm184_vm4, %v182_v49, %v179_v51 }
  0x71   :  { %v186_v54 = vadd.f32 %v185_v53, %v170_v21 }
  0x73   :  { %v187_v56 = vsel %vm171_vm5, %v1140_v61, %v186_v54  ;;  %v607_v61 = vld [vmem:[%s1183_s2] ss:$0 sm:$0xff] }
  0x74   :  { %811 = vlog2.f32 %v187_v56  ;;  %v200_v59 = vmul.f32 %v187_v56, %v61_v22  ;;  %v542_v62 = vmul.f32 %v187_v56, %v187_v56 }
  0x76   :  { %v201_v55 = vadd.f32 %v200_v59, %v59_v58  ;;  %v544_v25 = vadd.f32 %v543_v63, %v542_v62 }
  0x78   :  { %v545_v1 = vmul.f32 0.5, %v544_v25  ;;  %v394_v26 = vrot.slane %v201_v55, %v393_v24 }
  0x7a   :  { %v758_v28 = vadd.f32 %v610_v27, %v394_v26 }
  0x7e   :  { %v812_v60 = vpop.eup %811 }
  0x7f   :  { %v540_v0 = vmul.f32 0.6931472, %v812_v60 }
  0x81   :  { %v541_v29 = vsub.f32 0.0, %v540_v0 }
  0x83   :  { %v546_v2 = vadd.f32 %v545_v1, %v541_v29 }
  0x85   :  { %v621_v4 = vadd.f32 -0.5, %v546_v2 }
  0x87   :  { %v573_v52 = vsel %vm572_vm6, %v621_v4, 0.0 }
  0x88   :  { %574 = vadd.xlane.f32.xlu0 %v573_v52 }
  0xec   :  { %v295_v5 = vpop.f32.mrb[0].mxu0 }
  0xed   :  { %v296_v57 = vadd.f32 %v607_v61, %v295_v5  ;;  %v677_v7 = vpop.f32.mrb[1].mxu0 }
  0xef   :  { %716 = vmatmul.mubr.msk.f32.vlgmr.msra.gmra.mrb[0].mxu1 %vm396_vm2, %v296_v57 }
  0xf8   :  { %v561_v8 = vpop.xlane.xlu0 %560 }
  0xf9   :  { %v562_v9 = vrot.slane %v561_v8, 4 }
  0xfb   :  { %v563_v6 = vadd.f32 %v562_v9, %v561_v8 }
  0xfd   :  { %v564_v11 = vrot.slane %v563_v6, 2 }
  0xff   :  { %v565_v13 = vadd.f32 %v564_v11, %v563_v6 }
 0x101   :  { %v566_v15 = vrot.slane %v565_v13, 1 }
 0x103   :  { %v567_v17 = vadd.f32 %v566_v15, %v565_v13 }
 0x105   :  { %762 = vpush %v567_v17 }
 0x115   :  { %v575_v10 = vpop.xlane.xlu0 %574 }
 0x116   :  { %v576_v3 = vrot.slane %v575_v10, 4 }
 0x118   :  { %v577_v12 = vadd.f32 %v576_v3, %v575_v10 }
 0x11a   :  { %v578_v14 = vrot.slane %v577_v12, 2 }
 0x11c   :  { %v579_v16 = vadd.f32 %v578_v14, %v577_v12 }
 0x11e   :  { %v580_v18 = vrot.slane %v579_v16, 1 }
 0x120   :  { %v581_v19 = vadd.f32 %v580_v18, %v579_v16 }
 0x122   :  { %764 = vpush %v581_v19 }
 0x136   :  { %s763_s2 = spop %762 }
 0x137   :  { %v569_v30 = vstv %s763_s2 }
 0x138   :  { %v571_v35 = vmul.f32 0.00056689343, %v569_v30 }
 0x153   :  { %s765_s29 = spop %764 }
 0x154   :  { %v583_v31 = vstv %s765_s29 }
 0x155   :  { %v585_v36 = vmul.f32 0.023809524, %v583_v31 }
 0x157   :  { %v586_v38 = vadd.f32 %v585_v36, %v571_v35 }
 0x159   :  { %588 = vst.msk [vmem:[#allocation2] sm:$0x1] %vm587_vm7, %v586_v38 }
 0x1c2   :  { %v470_v32 = vpop.f32.mrb[0].mxu1 }
 0x1c3   :  { %v759_v33 = vadd.f32 %v758_v28, %v470_v32  ;;  %v717_v34 = vpop.f32.mrb[1].mxu1 }
 0x1c5   :  { %v475_v37 = vsel %vm396_vm2, %v759_v33, 0.0 }
 0x1c6   :  { %476 = vadd.xlane.f32.xlu1 %v475_v37 }
 0x1c7   :  { %824 = shalt.err (!%p821_p4)
}
 0x1c8   :  { %s825_s17 = scalar_lea.hbm %s1193_s12, 16 }
 0x1c9   :  { %p826_p5 = scmp.ne.s32.totalorder %s1193_s12, %s825_s17  ;;  %p829_p6 = scmp.lt.u32.totalorder %s825_s17, %s1193_s12 }
 0x1cb   :  { %p831_p7 = pnand %p829_p6, %p826_p5 }
 0x1cd   :  { %834 = shalt.err (!%p831_p7)
}
 0x1ce   :  { %600 = dma.vmem_to_hbm [thread:$0]  %s598_s13, 16, %s1193_s12, [#allocation3]   ;;  %vm479_vm8 = vcmask 7168  }
 0x253   :  { %v477_v39 = vpop.xlane.xlu1 %476 }
 0x254   :  { %v478_v40 = vmul.f32 0.023809524, %v477_v39 }
 0x256   :  { %480 = vst.msk [vmem:[%s1192_s11] sm:$0xff] %vm479_vm8, %v478_v40 }
 0x257   :  { %835 = dma.done.wait [#allocation3], 16  }
 0x258   :  { %836 = vsyncadd [#allocation3], 4294967280 }
 0x259   :  { %606 = vsyncpa [#allocation3], 1 }

</bundles_post_ra>
